<compile_context>
chip_gen: v6e
topology: v6e:2x2x1
jax: 0.10.0
libtpu: 0.0.40
codegen_flags: <defaults>
</compile_context>

<pallas_src>
import functools

import jax
import jax.numpy as jnp
from jax import lax
from jax.experimental import pallas as pl
from jax.experimental.pallas import tpu as pltpu


def _dwsep_kernel(x_ref, w_ref, scale_ref, shift_ref, o_ref, *, wp, compute_dtype):
    """One block of flattened output pixels per grid step.

    x_ref:     (1, Cpad, BLOCK_M + halo)  halo'd flat (reflect-padded) input
    w_ref:     (OutC, 9*Cpad)             fused depthwise*pointwise weights
    scale_ref: (OutC, 1)                  folded BN scale = gamma / sqrt(var + eps)
    shift_ref: (OutC, 1)                  folded BN shift = beta - mean * scale
    o_ref:     (OutC, BLOCK_M)            fused-conv output at stride-1 flat coords
    """
    block_m = o_ref.shape[1]
    xw = x_ref[0]                                            # (Cpad, BLOCK_M + halo)

    # im2col: the 9 taps are contiguous lane-offset windows of the flat input.
    taps = [xw[:, ki * wp + kj: ki * wp + kj + block_m]
            for ki in range(3) for kj in range(3)]
    patches = jnp.concatenate(taps, axis=0).astype(compute_dtype)   # (9*Cpad, BLOCK_M)

    # fused 3x3 conv == one MXU matmul with K = 9*Cpad.
    y = jnp.dot(w_ref[...], patches,
                preferred_element_type=jnp.float32)           # (OutC, BLOCK_M)

    # ReLU + folded BatchNorm (eval).  Dropout2d is identity in eval mode.
    y = jnp.maximum(y, 0.0)
    y = y * scale_ref[...] + shift_ref[...]
    o_ref[...] = y.astype(o_ref.dtype)


def depthwise_conv_layer(x_nchw, w_dw, w_pw, bn_gamma, bn_beta, bn_mean, bn_var,
                         *, stride, padding, eps=1e-5,
                         compute_dtype=jnp.float32, block_m=256):
    """Forward of DepthwiseConvLayer (eval mode).

    x_nchw: (N, C, H, W) float32
    w_dw:   (C, 1, 3, 3)    depthwise conv weight (PyTorch layout)
    w_pw:   (OutC, C, 1, 1) pointwise conv weight (PyTorch layout)
    Returns (N, OutC, Ho, Wo) float32.
    """
    n, c, h, w = x_nchw.shape
    outc = w_pw.shape[0]
    ho = (h + 2 * padding - 3) // stride + 1
    wo = (w + 2 * padding - 3) // stride + 1
    hp, wp = h + 2 * padding, w + 2 * padding

    # ---- glue: reflect pad, fold batch into one flat spatial axis ----
    x_pad = jnp.pad(x_nchw, ((0, 0), (0, 0), (padding, padding), (padding, padding)),
                    mode="reflect")                                   # (N, C, Hp, Wp)
    c_pad = ((c + 7) // 8) * 8                                        # sublane-align C
    x_flat = jnp.transpose(x_pad, (1, 0, 2, 3)).reshape(c, n * hp * wp)
    x_flat = jnp.pad(x_flat, ((0, c_pad - c), (0, 0)))                # (Cpad, N*Hp*Wp)

    # Flat coordinate of the stride-1 conv output: p = n0*Hp*Wp + i*Wp + j.
    max_off = 2 * wp + 2                                              # largest tap offset
    halo = ((max_off + 127) // 128) * 128
    m_valid = (n - 1) * hp * wp + (hp - 3) * wp + (wp - 2)            # last valid p + 1
    m_pad = ((m_valid + block_m - 1) // block_m) * block_m
    nb = m_pad // block_m
    l_flat = m_pad + halo                                             # >= n*hp*wp always
    x_flat = jnp.pad(x_flat, ((0, 0), (0, l_flat - n * hp * wp)))

    # Halo'd, non-overlapping block view: block b produces flat outputs
    # [b*block_m, (b+1)*block_m) and needs inputs up to +max_off past that.
    x_blocks = jnp.stack(
        [x_flat[:, b * block_m: b * block_m + block_m + halo] for b in range(nb)],
        axis=0)                                                       # (nb, Cpad, BM+halo)

    # Fused conv weight (OutC, 9*Cpad): tap-major / channel-minor row order.
    wdw = w_dw[:, 0]                                                  # (C, 3, 3)
    wpw = w_pw[:, :, 0, 0]                                            # (OutC, C)
    w_fused = jnp.einsum("oc,ckl->oklc", wpw, wdw)                    # (OutC, 3, 3, C)
    w_fused = jnp.pad(w_fused, ((0, 0), (0, 0), (0, 0), (0, c_pad - c)))
    w_fused = w_fused.reshape(outc, 9 * c_pad).astype(compute_dtype)

    # Folded BatchNorm (eval).
    scale = (bn_gamma / jnp.sqrt(bn_var + eps)).reshape(outc, 1).astype(jnp.float32)
    shift = (bn_beta - bn_mean * scale[:, 0]).reshape(outc, 1).astype(jnp.float32)

    y_flat = pl.pallas_call(
        functools.partial(_dwsep_kernel, wp=wp, compute_dtype=compute_dtype),
        out_shape=jax.ShapeDtypeStruct((outc, m_pad), jnp.float32),
        grid_spec=pltpu.PrefetchScalarGridSpec(
            num_scalar_prefetch=0,
            grid=(nb,),
            in_specs=[
                pl.BlockSpec((1, c_pad, block_m + halo), lambda b: (b, 0, 0)),
                pl.BlockSpec((outc, 9 * c_pad), lambda b: (0, 0)),
                pl.BlockSpec((outc, 1), lambda b: (0, 0)),
                pl.BlockSpec((outc, 1), lambda b: (0, 0)),
            ],
            out_specs=pl.BlockSpec((outc, block_m), lambda b: (0, b)),
        ),
        compiler_params=pltpu.CompilerParams(
            dimension_semantics=("parallel",),
            vmem_limit_bytes=32 * 1024 * 1024),
    )(x_blocks, w_fused, scale, shift)

    # ---- glue: keep valid stride-1 positions, decimate for stride > 1 ----
    l0 = n * hp * wp
    if m_pad >= l0:
        y_flat = y_flat[:, :l0]
    else:
        y_flat = jnp.pad(y_flat, ((0, 0), (0, l0 - m_pad)))
    y = y_flat.reshape(outc, n, hp, wp)[:, :, :ho * stride:stride, :wo * stride:stride]
    return jnp.transpose(y, (1, 0, 2, 3))                             # (N, OutC, Ho, Wo)


def _reference(x_nchw, w_dw, w_pw, bn_gamma, bn_beta, bn_mean, bn_var,
               *, stride, padding, eps=1e-5):
    """Plain-JAX reference (lax.conv) for a correctness check."""
    c = x_nchw.shape[1]
    x_pad = jnp.pad(x_nchw, ((0, 0), (0, 0), (padding, padding), (padding, padding)),
                    mode="reflect")
    dw = lax.conv_general_dilated(
        x_pad, w_dw, window_strides=(stride, stride), padding="VALID",
        dimension_numbers=("NCHW", "OIHW", "NCHW"), feature_group_count=c)
    pw = lax.conv_general_dilated(
        dw, w_pw, window_strides=(1, 1), padding="VALID",
        dimension_numbers=("NCHW", "OIHW", "NCHW"))
    y = jnp.maximum(pw, 0.0)
    scale = (bn_gamma / jnp.sqrt(bn_var + eps)).reshape(1, -1, 1, 1)
    shift = (bn_beta - bn_mean * (bn_gamma / jnp.sqrt(bn_var + eps))).reshape(1, -1, 1, 1)
    return y * scale + shift


if __name__ == "__main__":
    # Module config: DepthwiseConvLayer(inc=4, outc=8, s=1, p=1, dp_rate=0.1)
    INC, OUTC, PAD = 4, 8, 1
    N, H, W = 2, 16, 16

    key = jax.random.PRNGKey(0)
    k1, k2, k3 = jax.random.split(key, 3)

    x = jax.random.normal(k1, (N, INC, H, W), dtype=jnp.float32)
    w_dw = jax.random.normal(k2, (INC, 1, 3, 3), dtype=jnp.float32) * 0.2
    w_pw = jax.random.normal(k3, (OUTC, INC, 1, 1), dtype=jnp.float32) * 0.2

    # BatchNorm2d default init / running stats (eval mode).
    bn_gamma = jnp.ones((OUTC,), jnp.float32)
    bn_beta = jnp.zeros((OUTC,), jnp.float32)
    bn_mean = jnp.zeros((OUTC,), jnp.float32)
    bn_var = jnp.ones((OUTC,), jnp.float32)

    # stride=1, f32 MXU operands (exact path)
    out = depthwise_conv_layer(x, w_dw, w_pw, bn_gamma, bn_beta, bn_mean, bn_var,
                               stride=1, padding=PAD, compute_dtype=jnp.float32)
    out = jax.block_until_ready(out)
    ref = _reference(x, w_dw, w_pw, bn_gamma, bn_beta, bn_mean, bn_var,
                     stride=1, padding=PAD)
    assert out.shape == (N, OUTC, H, W), out.shape
    assert jnp.allclose(out, ref, atol=1e-4, rtol=1e-4), float(jnp.abs(out - ref).max())

    # stride=2 config (same module with s=2)
    out_s2 = depthwise_conv_layer(x, w_dw, w_pw, bn_gamma, bn_beta, bn_mean, bn_var,
                                  stride=2, padding=PAD, compute_dtype=jnp.float32)
    out_s2 = jax.block_until_ready(out_s2)
    ref_s2 = _reference(x, w_dw, w_pw, bn_gamma, bn_beta, bn_mean, bn_var,
                        stride=2, padding=PAD)
    assert out_s2.shape == ref_s2.shape, (out_s2.shape, ref_s2.shape)
    assert jnp.allclose(out_s2, ref_s2, atol=1e-4, rtol=1e-4), \
        float(jnp.abs(out_s2 - ref_s2).max())

    # bf16 MXU operands (v6e/v7x fast path) -- looser tolerance
    out_bf = depthwise_conv_layer(x, w_dw, w_pw, bn_gamma, bn_beta, bn_mean, bn_var,
                                  stride=1, padding=PAD, compute_dtype=jnp.bfloat16)
    out_bf = jax.block_until_ready(out_bf)
    assert jnp.allclose(out_bf, ref, atol=5e-2, rtol=5e-2), float(jnp.abs(out_bf - ref).max())

    print("KERNEL_OK")
</pallas_src>

<mosaic_0001>
module attributes {stable_mosaic.version = 11 : i64} {
  func.func @_dwsep_kernel(%arg0: i32, %arg1: memref<1x8x384xf32, #tpu.memory_space<vmem>>, %arg2: memref<8x72xf32, #tpu.memory_space<vmem>>, %arg3: memref<8x1xf32, #tpu.memory_space<vmem>>, %arg4: memref<8x1xf32, #tpu.memory_space<vmem>>, %arg5: memref<8x256xf32, #tpu.memory_space<vmem>>) attributes {dimension_semantics = [#tpu.dimension_semantics<parallel>], iteration_bounds = array<i64: 3>, scalar_prefetch = 0 : i64, scratch_operands = 0 : i64, tpu.core_type = #tpu.core_type<tc>, window_params = [{transform_indices = @transform_0, window_bounds = array<i64: 1, 8, 384>}, {pipeline_mode = #tpu.pipeline_mode<synchronous>, transform_indices = @transform_1, window_bounds = array<i64: 8, 72>}, {pipeline_mode = #tpu.pipeline_mode<synchronous>, transform_indices = @transform_2, window_bounds = array<i64: 8, 1>}, {pipeline_mode = #tpu.pipeline_mode<synchronous>, transform_indices = @transform_3, window_bounds = array<i64: 8, 1>}, {transform_indices = @transform_4, window_bounds = array<i64: 8, 256>}]} {
    %c0 = arith.constant 0 : index
    %c0_0 = arith.constant 0 : index
    %c0_1 = arith.constant 0 : index
    %0 = vector.load %arg1[%c0, %c0_0, %c0_1] : memref<1x8x384xf32, #tpu.memory_space<vmem>>, vector<1x8x384xf32>
    %1 = vector.shape_cast %0 : vector<1x8x384xf32> to vector<8x384xf32>
    %2 = vector.extract_strided_slice %1 {offsets = [0, 0], sizes = [8, 256], strides = [1, 1]} : vector<8x384xf32> to vector<8x256xf32>
    %3 = vector.extract_strided_slice %1 {offsets = [0, 1], sizes = [8, 256], strides = [1, 1]} : vector<8x384xf32> to vector<8x256xf32>
    %4 = vector.extract_strided_slice %1 {offsets = [0, 2], sizes = [8, 256], strides = [1, 1]} : vector<8x384xf32> to vector<8x256xf32>
    %5 = vector.extract_strided_slice %1 {offsets = [0, 18], sizes = [8, 256], strides = [1, 1]} : vector<8x384xf32> to vector<8x256xf32>
    %6 = vector.extract_strided_slice %1 {offsets = [0, 19], sizes = [8, 256], strides = [1, 1]} : vector<8x384xf32> to vector<8x256xf32>
    %7 = vector.extract_strided_slice %1 {offsets = [0, 20], sizes = [8, 256], strides = [1, 1]} : vector<8x384xf32> to vector<8x256xf32>
    %8 = vector.extract_strided_slice %1 {offsets = [0, 36], sizes = [8, 256], strides = [1, 1]} : vector<8x384xf32> to vector<8x256xf32>
    %9 = vector.extract_strided_slice %1 {offsets = [0, 37], sizes = [8, 256], strides = [1, 1]} : vector<8x384xf32> to vector<8x256xf32>
    %10 = vector.extract_strided_slice %1 {offsets = [0, 38], sizes = [8, 256], strides = [1, 1]} : vector<8x384xf32> to vector<8x256xf32>
    %11 = tpu.concatenate %2, %3, %4, %5, %6, %7, %8, %9, %10 in 0 : vector<8x256xf32>, vector<8x256xf32>, vector<8x256xf32>, vector<8x256xf32>, vector<8x256xf32>, vector<8x256xf32>, vector<8x256xf32>, vector<8x256xf32>, vector<8x256xf32> -> vector<72x256xf32>
    %c0_2 = arith.constant 0 : index
    %c0_3 = arith.constant 0 : index
    %12 = vector.load %arg2[%c0_2, %c0_3] : memref<8x72xf32, #tpu.memory_space<vmem>>, vector<8x72xf32>
    %cst = arith.constant dense<0.000000e+00> : vector<8x256xf32>
    %13 = tpu.matmul %12, %11, %cst {dimension_numbers = #tpu.dot_dimension_numbers<[1], [0], [0], [1], [0, 0, 1, 1], [], []>} : vector<8x72xf32>, vector<72x256xf32>, vector<8x256xf32> -> vector<8x256xf32>
    %cst_4 = arith.constant 0.000000e+00 : f32
    %14 = vector.broadcast %cst_4 : f32 to vector<8x256xf32>
    %15 = arith.maximumf %13, %14 : vector<8x256xf32>
    %c0_5 = arith.constant 0 : index
    %c0_6 = arith.constant 0 : index
    %16 = vector.load %arg3[%c0_5, %c0_6] : memref<8x1xf32, #tpu.memory_space<vmem>>, vector<8x1xf32>
    %17 = vector.broadcast %16 : vector<8x1xf32> to vector<8x256xf32>
    %18 = arith.mulf %15, %17 : vector<8x256xf32>
    %c0_7 = arith.constant 0 : index
    %c0_8 = arith.constant 0 : index
    %19 = vector.load %arg4[%c0_7, %c0_8] : memref<8x1xf32, #tpu.memory_space<vmem>>, vector<8x1xf32>
    %20 = vector.broadcast %19 : vector<8x1xf32> to vector<8x256xf32>
    %21 = arith.addf %18, %20 : vector<8x256xf32>
    %c0_9 = arith.constant 0 : index
    %c0_10 = arith.constant 0 : index
    %22 = vector.load %arg5[%c0_9, %c0_10] : memref<8x256xf32, #tpu.memory_space<vmem>>, vector<8x256xf32>
    tpu.vector_store %arg5[%c0_9, %c0_10], %21 {strides = array<i32>} : memref<8x256xf32, #tpu.memory_space<vmem>>, vector<8x256xf32>,
    return
  }
  func.func @transform_0(%arg0: i32) -> (i32, i32, i32) {
    %c0_i32 = arith.constant 0 : i32
    %c0_i32_0 = arith.constant 0 : i32
    %c0_i32_1 = arith.constant 0 : i32
    return %arg0, %c0_i32, %c0_i32_0 : i32, i32, i32
  }
  func.func @transform_1(%arg0: i32) -> (i32, i32) {
    %c0_i32 = arith.constant 0 : i32
    %c0_i32_0 = arith.constant 0 : i32
    %c0_i32_1 = arith.constant 0 : i32
    return %c0_i32, %c0_i32_0 : i32, i32
  }
  func.func @transform_2(%arg0: i32) -> (i32, i32) {
    %c0_i32 = arith.constant 0 : i32
    %c0_i32_0 = arith.constant 0 : i32
    %c0_i32_1 = arith.constant 0 : i32
    return %c0_i32, %c0_i32_0 : i32, i32
  }
  func.func @transform_3(%arg0: i32) -> (i32, i32) {
    %c0_i32 = arith.constant 0 : i32
    %c0_i32_0 = arith.constant 0 : i32
    %c0_i32_1 = arith.constant 0 : i32
    return %c0_i32, %c0_i32_0 : i32, i32
  }
  func.func @transform_4(%arg0: i32) -> (i32, i32) {
    %c0_i32 = arith.constant 0 : i32
    %c0_i32_0 = arith.constant 0 : i32
    return %c0_i32, %arg0 : i32, i32
  }
}

</mosaic_0001>

<bundles_post_ra>
// kernel: tpu_custom_call.1
= control target key start
LH: loop header
LB: loop body
LE: loop exit
PB: predicated region body
PF: predicated region fallthrough
CT: control target
= control target key end

     0   :  { %9 = vsyncpa [#allocation3], 0  ;;  %s854_s0 = inlined_call_operand.hbm [shape: f32[3,8,384], index: 0, kind: input, shape index: {}]   ;;  %s855_s1 = inlined_call_operand.vmem [shape: f32[8,72], index: 1, kind: input, shape index: {}]   ;;  %s856_s2 = inlined_call_operand.vmem [shape: f32[8,1], index: 2, kind: input, shape index: {}]   ;;  %s857_s3 = inlined_call_operand.vmem [shape: f32[8,1], index: 3, kind: input, shape index: {}]   ;;  %s858_s4 = inlined_call_operand.hbm [shape: f32[8,768], index: 4, kind: output, shape index: {}]  }
   0x1   :  { %11 = vsyncpa [#allocation3 + $0x1], 0 }
   0x2   :  { %12 = vsyncpa [#allocation4], 0 }
   0x3   :  { %14 = vsyncpa [#allocation4 + $0x1], 0  ;;  %s695_s15 = smov 0   ;;  %s697_s16 = smov 0  }
   0x4   :  { %s699_s17 = smov 0   ;;  %s701_s18 = smov 0  }
   0x5 LB: > { %s716_s19 = sadd.s32 4294967295, %s656_s18   ;;  %s490_s20 = sadd.s32 4294967294, %s656_s18   ;;  %s656_s18 = sphi %s701_s18, %s873_s18   ;;  %s652_s17 = sphi %s699_s17, %s872_s17   ;;  %s648_s16 = sphi %s697_s16, %s871_s16   ;;  %s644_s15 = sphi %s695_s15, %s870_s15  }
   0x6   : > { %s720_s21 = sadd.s32 1, %s656_s18   ;;  %s27_s22 = sadd.s32 1, %s652_s17 }
   0x7   : > { %s24_s23 = ssub.s32 %s656_s18, %s720_s21  ;;  %p34_p0 = scmp.ne.s32.totalorder %s652_s17, %s648_s16 }
   0x8   : > { %p25_p1 = scmp.eq.s32.totalorder %s24_s23, 0  ;;  %p35_p2 = scmp.eq.s32.totalorder %s656_s18, 0 }
   0x9   : > { %p40_p3 = scmp.ne.s32.totalorder %s648_s16, %s644_s15  ;;  %p41_p4 = scmp.eq.s32.totalorder %s716_s19, 0 }
   0xa   : > { %s732_s24 = scalar_select %p25_p1, %s652_s17, %s27_s22  }
   0xb   : > { %p36_p5 = por %p35_p2, %p34_p0  ;;  %p734_p6 = por %p41_p4, %p40_p3 }
   0xc   : > { %p127_p7 = scmp.eq.s32.totalorder %s716_s19, 2  ;;  %p133_p8 = scmp.eq.s32.totalorder %s490_s20, 2 }
   0xd   : > { %s861_s25 = scalar_select %p734_p6, 1, 0 }
   0xe   : > { %p518_p9 = scmp.lt.s32.totalorder %s656_s18, 3  ;;  %p740_p10 = por %p127_p7, %p34_p0 }
   0xf   : > { %p744_p11 = por %p133_p8, %p40_p3  ;;  %s162_s28 = sand.u32 1, %s652_s17  }
  0x10   : > { %s862_s26 = scalar_select %p740_p10, 1, 0 }
  0x11   : > { %s863_s27 = scalar_select %p744_p11, 1, 0 }
  0x12   : > { %s504_s29 = smul.u32 384, %s656_s18  ;;  %p755_p12 = pnand %p518_p9, %p36_p5 }
  0x13   : > { %s503_s30 = smul.u32 24, %s162_s28  ;;  %s163_s11 = scalar_lea.sflag [#allocation3], %s162_s28 }
  0x14   : > { %s753_s7 = scalar_lea.hbm %s854_s0, %s504_s29  ;;  %p566_p2 = pneg %p755_p12 }
  0x15   : > { %s166_s9 = scalar_lea.vmem [#allocation2], %s503_s30  ;;  %s564_s12 = scalar_lea.hbm %s753_s7, 384 }
  0x16   : > { %s174_s10 = sshll.u32 %s166_s9, 4  ;;  %p565_p1 = scmp.ne.s32.totalorder %s753_s7, %s564_s12  ;;  %s175_s10 = int_to_ptr.vmem [resolvable:$true] %s174_s10 }
  0x17   : > { %s569_s20 = scalar_lea.hbm %s854_s0, 1152  ;;  %p570_p5 = scmp.lt.s32.totalorder %s753_s7, %s854_s0 }
  0x18   : > { %p567_p3 = pnand %p566_p2, %p565_p1  ;;  %p571_p7 = scmp.lt.s32.totalorder %s569_s20, %s564_s12 }
  0x1a   : > { %p568_p4 = pneg %p567_p3  ;;  %p572_p8 = por %p571_p7, %p570_p5 }
  0x1c   : > { %p573_p9 = pnand %p572_p8, %p568_p4 }
  0x1e   : > { %576 = shalt.err (!%p573_p9)
}
  0x1f   : > { %s577_s29 = scalar_lea.vmem %s175_s10, 384  ;;  %s658_s28 = smov [#allocation2]  }
  0x20   : > { %p578_p13 = scmp.ne.s32.totalorder %s175_s10, %s577_s29  ;;  %s582_s30 = sshll.u32 %s658_s28, 4  ;;  %s583_s30 = int_to_ptr.vmem [resolvable:$false] %s582_s30 }
  0x21   : > { %s584_s5 = scalar_lea.vmem %s583_s30, 768  ;;  %p585_p1 = scmp.lt.s32.totalorder %s175_s10, %s583_s30 }
  0x22   : > { %p580_p0 = pnand %p578_p13, %p566_p2  ;;  %p586_p3 = scmp.lt.s32.totalorder %s584_s5, %s577_s29 }
  0x24   : > { %p581_p11 = pneg %p580_p0  ;;  %p587_p10 = por %p586_p3, %p585_p1 }
  0x26   : > { %p588_p6 = pnand %p587_p10, %p581_p11 }
  0x28   : > { %591 = shalt.err (!%p588_p6)
}
  0x29   : > { %513 = dma.hbm_to_vmem [thread:$0]  (!%p755_p12), %s753_s7, 384, %s175_s10, %s163_s11  }
  0x2a   : > { %p865_p4 = scmp.lt.s32.totalorder %s656_s18, 4  ;;  %p866_p5 = scmp.ge.s32.totalorder %s656_s18, 1 }
  0x2c   : > { %p180_p7 = pnand %p866_p5, %p865_p4 }
  0x2d   : > { %s780_s6 = sand.u32 (!%p180_p7), 1, %s648_s16   ;;  %p867_p6 = scmp.ne.s32.totalorder (!%p180_p7), %s861_s25, 0 }
  0x2e   : > { %183 = sbr.rel (%p180_p7) target bundleno = 431 (0x1af), region = 36  ;;  %s186_s12 = scalar_lea.sflag (!%p180_p7), [#allocation3], %s780_s6 }
  0x2f   : > { %s505_s9 = smul.u32 (!%p180_p7), 24, %s780_s6 }
  0x31   : > { %s189_s13 = scalar_lea.vmem (!%p180_p7), [#allocation2], %s505_s9 }
  0x33   : > { %635 = dma.done.wait (%p867_p6), %s186_s12, 384  }
  0x34   : > { %637 = vsyncadd (%p867_p6), %s186_s12, 4294966912  ;;  %v788_v0 = vld [vmem:[%s189_s13 + $0x8] sm:$0xff]  ;;  %v790_v1 = vld [vmem:[%s189_s13] sm:$0xff]  ;;  %s659_s7 = smov 90   ;;  %s660_s8 = smov 91   ;;  %v665_v3 = vmov 0.0  }
  0x35   : > { %300 = vrot.lane.b32.xlu0 %v788_v0, %s659_s7  ;;  %298 = vrot.lane.b32.xlu1 %v790_v1, %s659_s7  ;;  %v217_v2 = vld [vmem:[%s189_s13 + $0x10] sm:$0xff]  ;;  %s661_s10 = smov 92   ;;  %s662_s25 = smov 108   ;;  %v667_v4 = vmov 0   ;;  %v387_v5 = vld [vmem:[%s856_s2] sm:$0xff]  ;;  %vm304_vm0 = vcmask 736256  }
  0x36   : > { %s663_s11 = smov 109   ;;  %s664_s14 = smov 110   ;;  %378 = vmatprep.mubr.f32.mxu0 %v665_v3  ;;  %562 = vset.pattern.permute.xlu0 %v667_v4  ;;  %v395_v6 = vld [vmem:[%s857_s3] sm:$0xff]  ;;  %vm293_vm1 = vcmask 744448   ;;  %vm282_vm2 = vcmask 752640   ;;  %vm271_vm3 = vcmask 883712  }
  0x37   : > { %s666_s20 = smov 126   ;;  %563 = vset.pattern.permute.xlu1 %v667_v4  ;;  %s668_s22 = smov 127   ;;  %vm260_vm4 = vcmask 891904   ;;  %vm249_vm5 = vcmask 900096   ;;  %vm238_vm6 = vcmask 1031168   ;;  %vm227_vm7 = vcmask 1039360  }
  0x38   : > { %v309_v47 = vld [vmem:[%s855_s1] sm:$0xff]  ;;  %vm310_vm8 = vcmask 588800   ;;  %s495_s12 = sshll.u32 %s780_s6, 4  ;;  %s502_s13 = sshll.u32 %s716_s19, 8 }
  0x39   : > { %302 = vrot.lane.b32.xlu0 %v217_v2, %s659_s7  ;;  %289 = vrot.lane.b32.xlu1 %v788_v0, %s660_s8  ;;  %s213_s7 = scalar_lea.vmem [#allocation5], %s495_s12  ;;  %p868_p11 = scmp.ne.s32.totalorder %s862_s26, 0 }
  0x3d   : > { %291 = vrot.lane.b32.xlu0 %v217_v2, %s660_s8  ;;  %287 = vrot.lane.b32.xlu1 %v790_v1, %s660_s8  ;;  %s420_s8 = sshll.u32 %s213_s7, 4  ;;  %s421_s8 = int_to_ptr.vmem [resolvable:$true] %s420_s8 }
  0x41   : > { %278 = vrot.lane.b32.xlu0 %v788_v0, %s661_s10  ;;  %280 = vrot.lane.b32.xlu1 %v217_v2, %s661_s10 }
  0x45   : > { %276 = vrot.lane.b32.xlu0 %v790_v1, %s661_s10  ;;  %267 = vrot.lane.b32.xlu1 %v788_v0, %s662_s25 }
  0x49   : > { %269 = vrot.lane.b32.xlu0 %v217_v2, %s662_s25  ;;  %265 = vrot.lane.b32.xlu1 %v790_v1, %s662_s25 }
  0x4d   : > { %256 = vrot.lane.b32.xlu0 %v788_v0, %s663_s11  ;;  %258 = vrot.lane.b32.xlu1 %v217_v2, %s663_s11 }
  0x51   : > { %254 = vrot.lane.b32.xlu0 %v790_v1, %s663_s11  ;;  %245 = vrot.lane.b32.xlu1 %v788_v0, %s664_s14  ;;  %s418_s11 = scalar_lea.hbm %s858_s4, %s502_s13 }
  0x55   : > { %247 = vrot.lane.b32.xlu0 %v217_v2, %s664_s14  ;;  %243 = vrot.lane.b32.xlu1 %v790_v1, %s664_s14  ;;  %s406_s14 = scalar_lea.sflag [#allocation4], %s780_s6 }
  0x59   : > { %234 = vrot.lane.b32.xlu0 %v788_v0, %s666_s20  ;;  %236 = vrot.lane.b32.xlu1 %v217_v2, %s666_s20 }
  0x5d   : > { %232 = vrot.lane.b32.xlu0 %v790_v1, %s666_s20  ;;  %223 = vrot.lane.b32.xlu1 %v788_v0, %s668_s22  ;;  %s592_s20 = scalar_lea.vmem %s421_s8, 256 }
  0x5e   : > { %p593_p10 = scmp.ne.s32.totalorder %s421_s8, %s592_s20 }
  0x60   : > { %p594_p12 = pnand %p593_p10, %p868_p11 }
  0x61   : > { %225 = vrot.lane.b32.xlu0 %v217_v2, %s668_s22  ;;  %221 = vrot.lane.b32.xlu1 %v790_v1, %s668_s22  ;;  %s669_s22 = smov [#allocation5]  }
  0x62   : > { %p595_p13 = pneg %p594_p12  ;;  %s596_s19 = sshll.u32 %s669_s22, 4  ;;  %s597_s19 = int_to_ptr.vmem [resolvable:$false] %s596_s19 }
  0x63   : > { %s598_s23 = scalar_lea.vmem %s597_s19, 512  ;;  %p599_p0 = scmp.lt.s32.totalorder %s421_s8, %s597_s19 }
  0x64   : > { %p600_p2 = scmp.lt.s32.totalorder %s598_s23, %s592_s20 }
  0x65   : > { %390 = vperm.xlu0 %562, %v387_v5   ;;  %398 = vperm.xlu1 %563, %v395_v6  }
  0x66   : > { %p601_p8 = por %p600_p2, %p599_p0 }
  0x68   : > { %p602_p9 = pnand %p601_p8, %p595_p13 }
  0xa7   : > { %v301_v7 = vpop.permute.xlu0 %300  ;;  %v299_v8 = vpop.permute.xlu1 %298 }
  0xa8   : > { %v305_v12 = vsel %vm304_vm0, %v299_v8, %v301_v7 }
  0xab   : > { %v303_v9 = vpop.permute.xlu0 %302  ;;  %v290_v10 = vpop.permute.xlu1 %289 }
  0xac   : > { %v306_v11 = vsel %vm304_vm0, %v301_v7, %v303_v9 }
  0xad   : > { %328 = vmatprep.subr.mxu0 %v306_v11 }
  0xae   : > { %329 = vmatpush1.msra.mxu0 %v305_v12 }
  0xaf   : > { %v292_v13 = vpop.permute.xlu0 %291  ;;  %v288_v14 = vpop.permute.xlu1 %287 }
  0xb0   : > { %v295_v15 = vsel %vm293_vm1, %v290_v10, %v292_v13  ;;  %v294_v16 = vsel %vm293_vm1, %v288_v14, %v290_v10 }
  0xb1   : > { %330 = vmatprep.subr.mxu0 %v295_v15 }
  0xb2   : > { %331 = vmatpush1.msra.mxu0 %v294_v16 }
  0xb3   : > { %v279_v17 = vpop.permute.xlu0 %278  ;;  %v281_v18 = vpop.permute.xlu1 %280 }
  0xb4   : > { %v284_v19 = vsel %vm282_vm2, %v279_v17, %v281_v18 }
  0xb5   : > { %332 = vmatprep.subr.mxu0 %v284_v19 }
  0xb7   : > { %v277_v20 = vpop.permute.xlu0 %276  ;;  %v268_v21 = vpop.permute.xlu1 %267 }
  0xb8   : > { %v283_v22 = vsel %vm282_vm2, %v277_v20, %v279_v17 }
  0xb9   : > { %333 = vmatpush1.msra.mxu0 %v283_v22 }
  0xbb   : > { %v270_v23 = vpop.permute.xlu0 %269  ;;  %v266_v24 = vpop.permute.xlu1 %265 }
  0xbc   : > { %v273_v25 = vsel %vm271_vm3, %v268_v21, %v270_v23  ;;  %v272_v26 = vsel %vm271_vm3, %v266_v24, %v268_v21 }
  0xbd   : > { %334 = vmatprep.subr.mxu0 %v273_v25 }
  0xbe   : > { %335 = vmatpush1.msra.mxu0 %v272_v26 }
  0xbf   : > { %v257_v27 = vpop.permute.xlu0 %256  ;;  %v259_v28 = vpop.permute.xlu1 %258 }
  0xc0   : > { %v262_v29 = vsel %vm260_vm4, %v257_v27, %v259_v28 }
  0xc1   : > { %336 = vmatprep.subr.mxu0 %v262_v29 }
  0xc3   : > { %v255_v30 = vpop.permute.xlu0 %254  ;;  %v246_v31 = vpop.permute.xlu1 %245 }
  0xc4   : > { %v261_v32 = vsel %vm260_vm4, %v255_v30, %v257_v27 }
  0xc5   : > { %337 = vmatpush1.msra.mxu0 %v261_v32 }
  0xc7   : > { %v248_v33 = vpop.permute.xlu0 %247  ;;  %v244_v34 = vpop.permute.xlu1 %243 }
  0xc8   : > { %v251_v35 = vsel %vm249_vm5, %v246_v31, %v248_v33  ;;  %v250_v36 = vsel %vm249_vm5, %v244_v34, %v246_v31 }
  0xc9   : > { %338 = vmatprep.subr.mxu0 %v251_v35 }
  0xca   : > { %339 = vmatpush1.msra.mxu0 %v250_v36 }
  0xcb   : > { %v235_v37 = vpop.permute.xlu0 %234  ;;  %v237_v38 = vpop.permute.xlu1 %236 }
  0xcc   : > { %v240_v39 = vsel %vm238_vm6, %v235_v37, %v237_v38 }
  0xcd   : > { %340 = vmatprep.subr.mxu0 %v240_v39 }
  0xcf   : > { %v233_v40 = vpop.permute.xlu0 %232  ;;  %v224_v41 = vpop.permute.xlu1 %223 }
  0xd0   : > { %v239_v42 = vsel %vm238_vm6, %v233_v40, %v235_v37 }
  0xd1   : > { %341 = vmatpush1.msra.mxu0 %v239_v42 }
  0xd3   : > { %v226_v43 = vpop.permute.xlu0 %225  ;;  %v222_v44 = vpop.permute.xlu1 %221 }
  0xd4   : > { %v229_v45 = vsel %vm227_vm7, %v224_v41, %v226_v43  ;;  %v228_v46 = vsel %vm227_vm7, %v222_v44, %v224_v41 }
  0xd5   : > { %342 = vmatprep.subr.mxu0 %v229_v45 }
  0xd6   : > { %343 = vmatpush1.msra.mxu0 %v228_v46 }
  0xd7   : > { %344 = vmatprep.subr.mxu0 %v788_v0 }
  0xd8   : > { %345 = vmatpush1.msra.mxu0 %v790_v1 }
  0xd9   : > { %496 = vmatmul.mubr.msk.f32.vlgmr.msra.gmra.mxu0 %vm310_vm8, %v309_v47 }
  0xe0   : > { %v391_v49 = vpop.permute.xlu0 %390  ;;  %v399_v52 = vpop.permute.xlu1 %398 }
 0x199   : > { %v380_v48 = vpop.f32.mrf.mxu0 }
 0x19a   : > { %v385_v50 = vmax.f32 %v380_v48, 0.0 }
 0x19b   : > { %v382_v51 = vpop.f32.mrf.mxu0 }
 0x19c   : > { %v393_v53 = vmul.f32 %v391_v49, %v385_v50  ;;  %v386_v54 = vmax.f32 %v382_v51, 0.0 }
 0x19e   : > { %v394_v55 = vmul.f32 %v391_v49, %v386_v54  ;;  %v401_v56 = vadd.f32 %v399_v52, %v393_v53 }
 0x1a0   : > { %v402_v57 = vadd.f32 %v399_v52, %v394_v55  ;;  %403 = vst [vmem:[%s213_s7] sm:$0xff] %v401_v56 }
 0x1a2   : > { %404 = vst [vmem:[%s213_s7 + $0x8] sm:$0xff] %v402_v57 }
 0x1a3   : > { %605 = shalt.err (!%p602_p9)
}
 0x1a4   : > { %s606_s29 = scalar_lea.hbm %s418_s11, 256  ;;  %s610_s30 = scalar_lea.hbm %s858_s4, 768 }
 0x1a5   : > { %p607_p1 = scmp.ne.s32.totalorder %s418_s11, %s606_s29  ;;  %p611_p5 = scmp.lt.s32.totalorder %s418_s11, %s858_s4 }
 0x1a6   : > { %p612_p7 = scmp.lt.s32.totalorder %s610_s30, %s606_s29 }
 0x1a7   : > { %p608_p3 = pnand %p607_p1, %p868_p11 }
 0x1a8   : > { %p613_p6 = por %p612_p7, %p611_p5 }
 0x1a9   : > { %p609_p4 = pneg %p608_p3 }
 0x1ab   : > { %p614_p10 = pnand %p613_p6, %p609_p4 }
 0x1ad   : > { %617 = shalt.err (!%p614_p10)
}
 0x1ae   : > { %508 = dma.vmem_to_hbm [thread:$0]  (%p868_p11), %s421_s8, 256, %s418_s11, %s406_s14  }
 0x1af PF: > { %p519_p12 = scmp.ge.s32.totalorder %s656_s18, 2  ;;  %s432_s12 = sand.u32 1, %s644_s15  }
 0x1b0   : > { %p869_p13 = scmp.ne.s32.totalorder %s863_s27, 0  ;;  %s433_s13 = scalar_lea.sflag [#allocation4], %s432_s12 }
 0x1b2   : > { %p515_p0 = pnand %p519_p12, %p869_p13 }
 0x1b4   : > { %p516_p2 = pneg %p515_p0 }
 0x1b6   : > { %639 = dma.done.wait (%p516_p2), %s433_s13, 256  }
 0x1b7   : > { %641 = vsyncadd (%p516_p2), %s433_s13, 4294967040  ;;  %p17_p8 = scmp.ge.s32.totalorder %s720_s21, 5   ;;  %s870_s15 = smov %s648_s16 }
 0x1b8   : > { %s871_s16 = smov %s652_s17  ;;  %s872_s17 = smov %s732_s24 }
 0x1b9   : > { %s873_s18 = smov %s720_s21  ;;  %19 = sbr.rel (!%p17_p8) target bundleno = 5 (0x5), region = 81 }
 0x1be   :  { %438 = vsyncpa [#allocation3], 1 }
 0x1bf   :  { %440 = vsyncpa [#allocation3 + $0x1], 1 }
 0x1c0   :  { %441 = vsyncpa [#allocation4], 1 }
 0x1c1   :  { %443 = vsyncpa [#allocation4 + $0x1], 1 }

</bundles_post_ra>
